<compile_context>
chip_gen: v7x
topology: tpu7x:2x2x1
jax: 0.10.0
libtpu: 0.0.40
codegen_flags: <defaults>
</compile_context>

<pallas_src>
import functools

import jax
import jax.numpy as jnp
from jax.experimental import pallas as pl
from jax.experimental.pallas import tpu as pltpu


def _round_up(x, m):
    return ((x + m - 1) // m) * m


def _gelu_exact(z):
    # PyTorch nn.GELU default (approximate='none'): 0.5*z*(1+erf(z/sqrt(2)))
    return 0.5 * z * (1.0 + jax.lax.erf(z * 0.7071067811865476))


def _temporal_conv_kernel(p_ref, w_ref, g_ref, b_ref, o_ref, sum_ref, sq_ref,
                          *, group_norm, eps, t_valid, t_tile):
    # p_ref: (1, t_tile, CK_pad) patch tile for one batch element
    # w_ref: (CK_pad, C_out_pad) flattened conv weight (zero-padded)
    # g_ref, b_ref: (1, C_out_pad) GroupNorm affine (zero-padded)
    # o_ref: (1, T_out_pad, C_out_pad) -- resident across the T-tile axis
    # sum_ref, sq_ref: (1, C_out_pad) per-channel running sum / sum of squares
    t = pl.program_id(1)
    nt = pl.num_programs(1)

    # Conv1d (no bias) == matmul on the MXU, f32 accumulation.
    y = jnp.dot(p_ref[0], w_ref[...], preferred_element_type=jnp.float32)

    row = pl.multiple_of(t * t_tile, t_tile)

    if group_norm:
        @pl.when(t == 0)
        def _init():
            sum_ref[...] = jnp.zeros_like(sum_ref)
            sq_ref[...] = jnp.zeros_like(sq_ref)

        # Padded T rows / CK cols are exact zeros, so they add nothing here.
        sum_ref[...] += jnp.sum(y, axis=0, keepdims=True)
        sq_ref[...] += jnp.sum(y * y, axis=0, keepdims=True)

        # Stage raw conv output into the resident output block.
        o_ref[0, pl.ds(row, t_tile), :] = y

        @pl.when(t == nt - 1)
        def _finalize():
            inv_n = 1.0 / t_valid                     # Python float (trace-time)
            mean = sum_ref[...] * inv_n
            var = sq_ref[...] * inv_n - mean * mean   # biased, like PyTorch GN
            # Fold affine into a single scale/shift: one FMA per element.
            scale = g_ref[...] * jax.lax.rsqrt(var + eps)
            shift = b_ref[...] - mean * scale
            z = o_ref[0] * scale + shift
            o_ref[0] = _gelu_exact(z).astype(o_ref.dtype)
    else:
        o_ref[0, pl.ds(row, t_tile), :] = _gelu_exact(y).astype(o_ref.dtype)


def temporal_convolution(x, weight, gamma, beta, *, kernel_size, stride,
                         group_norm=True, eps=1e-5):
    """x: (B, C_in, T) f32; weight: (C_out, C_in, K); gamma/beta: (C_out,).
    Returns (B, C_out, T_out) matching PyTorch TemporalConvolution.forward."""
    B, C_in, T = x.shape
    C_out, _, K = weight.shape
    assert K == kernel_size
    T_out = (T - K) // stride + 1
    CK = C_in * K

    # ---- lane-dense padding and T tiling ------------------------------------
    C_out_pad = _round_up(C_out, 128)
    CK_pad = _round_up(CK, 128)
    t_tile = min(256, _round_up(T_out, 8))
    T_out_pad = _round_up(T_out, t_tile)
    n_t = T_out_pad // t_tile

    # ---- glue: im2col in plain JAX -------------------------------------------
    # TODO(synk): move im2col into the kernel (K strided matmuls over the raw
    # (C_in, T) slab) to cut HBM read traffic by ~K/stride on large inputs.
    idx = jnp.arange(T_out)[:, None] * stride + jnp.arange(K)[None, :]  # (T_out, K)
    patches = x[:, :, idx]                                   # (B, C_in, T_out, K)
    patches = jnp.transpose(patches, (0, 2, 1, 3)).reshape(B, T_out, CK)
    patches = jnp.pad(patches.astype(jnp.float32),
                      ((0, 0), (0, T_out_pad - T_out), (0, CK_pad - CK)))

    w_mat = weight.reshape(C_out, CK).T.astype(jnp.float32)            # (CK, C_out)
    w_mat = jnp.pad(w_mat, ((0, CK_pad - CK), (0, C_out_pad - C_out)))
    g = jnp.pad(gamma.astype(jnp.float32), (0, C_out_pad - C_out)).reshape(1, C_out_pad)
    b = jnp.pad(beta.astype(jnp.float32), (0, C_out_pad - C_out)).reshape(1, C_out_pad)

    kernel = functools.partial(_temporal_conv_kernel,
                               group_norm=bool(group_norm),
                               eps=float(eps),
                               t_valid=int(T_out),
                               t_tile=int(t_tile))

    # Explicit VMEM budget (double-buffered patch tile, resident output block,
    # weight, affine + stats scratch), with headroom; capped for v7x's 64 MiB.
    vmem_bytes = 4 * (2 * t_tile * CK_pad
                      + 2 * T_out_pad * C_out_pad
                      + 2 * CK_pad * C_out_pad
                      + 8 * C_out_pad) + (1 << 20)
    vmem_limit = int(min(max(vmem_bytes, 32 << 20), 100 << 20))

    out = pl.pallas_call(
        kernel,
        out_shape=jax.ShapeDtypeStruct((B, T_out_pad, C_out_pad), jnp.float32),
        grid_spec=pltpu.PrefetchScalarGridSpec(
            num_scalar_prefetch=0,
            grid=(B, n_t),
            in_specs=[
                pl.BlockSpec((1, t_tile, CK_pad), lambda i, j: (i, j, 0)),
                pl.BlockSpec((CK_pad, C_out_pad), lambda i, j: (0, 0)),
                pl.BlockSpec((1, C_out_pad), lambda i, j: (0, 0)),
                pl.BlockSpec((1, C_out_pad), lambda i, j: (0, 0)),
            ],
            out_specs=pl.BlockSpec((1, T_out_pad, C_out_pad), lambda i, j: (i, 0, 0)),
            scratch_shapes=[pltpu.VMEM((1, C_out_pad), jnp.float32),
                            pltpu.VMEM((1, C_out_pad), jnp.float32)],
        ),
        compiler_params=pltpu.CompilerParams(
            dimension_semantics=("parallel", "arbitrary"),
            vmem_limit_bytes=vmem_limit),
    )(patches, w_mat, g, b)

    out = out[:, :T_out, :C_out]            # strip lane / sublane padding
    return jnp.transpose(out, (0, 2, 1))    # back to PyTorch (B, C_out, T_out)


def _reference(x, weight, gamma, beta, *, stride, group_norm, eps=1e-5):
    y = jax.lax.conv_general_dilated(
        x, weight, window_strides=(stride,), padding="VALID",
        dimension_numbers=("NCH", "OIH", "NCH"))
    if group_norm:
        mean = y.mean(axis=2, keepdims=True)
        var = y.var(axis=2, keepdims=True)
        y = (y - mean) / jnp.sqrt(var + eps)
        y = y * gamma[None, :, None] + beta[None, :, None]
    return 0.5 * y * (1.0 + jax.lax.erf(y * 0.7071067811865476))


if __name__ == "__main__":
    # Small shapes consistent with the module: Conv1d over (B, C_in, T).
    B, C_in, T = 2, 4, 16
    C_out, K, S = 8, 3, 2
    group_norm = True

    key = jax.random.PRNGKey(0)
    kx, kw, kg, kb = jax.random.split(key, 4)
    x = jax.random.normal(kx, (B, C_in, T), dtype=jnp.float32)
    weight = jax.random.normal(kw, (C_out, C_in, K), dtype=jnp.float32) * 0.2
    gamma = 1.0 + 0.1 * jax.random.normal(kg, (C_out,), dtype=jnp.float32)
    beta = 0.1 * jax.random.normal(kb, (C_out,), dtype=jnp.float32)

    out = temporal_convolution(x, weight, gamma, beta,
                               kernel_size=K, stride=S, group_norm=group_norm)
    out = jax.block_until_ready(out)

    ref = _reference(x, weight, gamma, beta, stride=S, group_norm=group_norm)
    assert out.shape == (B, C_out, (T - K) // S + 1)
    assert jnp.allclose(out, ref, atol=1e-4, rtol=1e-4), "mismatch vs reference"
    print("KERNEL_OK")
</pallas_src>

<mosaic_0001>
module attributes {stable_mosaic.version = 11 : i64} {
  func.func @_temporal_conv_kernel(%arg0: i32, %arg1: i32, %arg2: memref<1x8x128xf32, #tpu.memory_space<vmem>>, %arg3: memref<128x128xf32, #tpu.memory_space<vmem>>, %arg4: memref<1x128xf32, #tpu.memory_space<vmem>>, %arg5: memref<1x128xf32, #tpu.memory_space<vmem>>, %arg6: memref<1x8x128xf32, #tpu.memory_space<vmem>>, %arg7: memref<1x128xf32, #tpu.memory_space<vmem>>, %arg8: memref<1x128xf32, #tpu.memory_space<vmem>>) attributes {dimension_semantics = [#tpu.dimension_semantics<parallel>, #tpu.dimension_semantics<arbitrary>], iteration_bounds = array<i64: 2, 1>, scalar_prefetch = 0 : i64, scratch_operands = 2 : i64, tpu.core_type = #tpu.core_type<tc>, window_params = [{transform_indices = @transform_0, window_bounds = array<i64: 1, 8, 128>}, {pipeline_mode = #tpu.pipeline_mode<synchronous>, transform_indices = @transform_1, window_bounds = array<i64: 128, 128>}, {pipeline_mode = #tpu.pipeline_mode<synchronous>, transform_indices = @transform_2, window_bounds = array<i64: 1, 128>}, {pipeline_mode = #tpu.pipeline_mode<synchronous>, transform_indices = @transform_3, window_bounds = array<i64: 1, 128>}, {transform_indices = @transform_4, window_bounds = array<i64: 1, 8, 128>}]} {
    %c0 = arith.constant 0 : index
    %c0_0 = arith.constant 0 : index
    %c0_1 = arith.constant 0 : index
    %0 = vector.load %arg2[%c0, %c0_0, %c0_1] : memref<1x8x128xf32, #tpu.memory_space<vmem>>, vector<1x8x128xf32>
    %1 = vector.shape_cast %0 : vector<1x8x128xf32> to vector<8x128xf32>
    %c0_2 = arith.constant 0 : index
    %c0_3 = arith.constant 0 : index
    %2 = vector.load %arg3[%c0_2, %c0_3] : memref<128x128xf32, #tpu.memory_space<vmem>>, vector<128x128xf32>
    %cst = arith.constant dense<0.000000e+00> : vector<8x128xf32>
    %3 = tpu.matmul %1, %2, %cst {dimension_numbers = #tpu.dot_dimension_numbers<[1], [0], [0], [1], [0, 0, 1, 1], [], []>} : vector<8x128xf32>, vector<128x128xf32>, vector<8x128xf32> -> vector<8x128xf32>
    %c8_i32 = arith.constant 8 : i32
    %4 = arith.muli %arg1, %c8_i32 : i32
    %5 = tpu.assume_multiple %4, 8 : i32
    %c0_i32 = arith.constant 0 : i32
    %6 = arith.cmpi eq, %arg1, %c0_i32 : i32
    %7 = arith.extui %6 : i1 to i32
    %c0_i32_4 = arith.constant 0 : i32
    %8 = arith.cmpi ne, %7, %c0_i32_4 : i32
    scf.if %8 {
      %cst_19 = arith.constant 0.000000e+00 : f32
      %27 = vector.broadcast %cst_19 : f32 to vector<1x128xf32>
      %c0_20 = arith.constant 0 : index
      %c0_21 = arith.constant 0 : index
      %28 = vector.load %arg7[%c0_20, %c0_21] : memref<1x128xf32, #tpu.memory_space<vmem>>, vector<1x128xf32>
      tpu.vector_store %arg7[%c0_20, %c0_21], %27 {strides = array<i32>} : memref<1x128xf32, #tpu.memory_space<vmem>>, vector<1x128xf32>,
      %cst_22 = arith.constant 0.000000e+00 : f32
      %29 = vector.broadcast %cst_22 : f32 to vector<1x128xf32>
      %c0_23 = arith.constant 0 : index
      %c0_24 = arith.constant 0 : index
      %30 = vector.load %arg8[%c0_23, %c0_24] : memref<1x128xf32, #tpu.memory_space<vmem>>, vector<1x128xf32>
      tpu.vector_store %arg8[%c0_23, %c0_24], %29 {strides = array<i32>} : memref<1x128xf32, #tpu.memory_space<vmem>>, vector<1x128xf32>,
    } else {
    }
    %c0_5 = arith.constant 0 : index
    %c0_6 = arith.constant 0 : index
    %9 = vector.load %arg7[%c0_5, %c0_6] : memref<1x128xf32, #tpu.memory_space<vmem>>, vector<1x128xf32>
    %cst_7 = arith.constant dense<0.000000e+00> : vector<128xf32>
    %10 = vector.multi_reduction <add>, %3, %cst_7 [0] : vector<8x128xf32> to vector<128xf32>
    %11 = vector.shape_cast %10 : vector<128xf32> to vector<1x128xf32>
    %12 = arith.addf %9, %11 : vector<1x128xf32>
    %c0_8 = arith.constant 0 : index
    %c0_9 = arith.constant 0 : index
    %13 = vector.load %arg7[%c0_8, %c0_9] : memref<1x128xf32, #tpu.memory_space<vmem>>, vector<1x128xf32>
    tpu.vector_store %arg7[%c0_8, %c0_9], %12 {strides = array<i32>} : memref<1x128xf32, #tpu.memory_space<vmem>>, vector<1x128xf32>,
    %c0_10 = arith.constant 0 : index
    %c0_11 = arith.constant 0 : index
    %14 = vector.load %arg8[%c0_10, %c0_11] : memref<1x128xf32, #tpu.memory_space<vmem>>, vector<1x128xf32>
    %15 = arith.mulf %3, %3 : vector<8x128xf32>
    %cst_12 = arith.constant dense<0.000000e+00> : vector<128xf32>
    %16 = vector.multi_reduction <add>, %15, %cst_12 [0] : vector<8x128xf32> to vector<128xf32>
    %17 = vector.shape_cast %16 : vector<128xf32> to vector<1x128xf32>
    %18 = arith.addf %14, %17 : vector<1x128xf32>
    %c0_13 = arith.constant 0 : index
    %c0_14 = arith.constant 0 : index
    %19 = vector.load %arg8[%c0_13, %c0_14] : memref<1x128xf32, #tpu.memory_space<vmem>>, vector<1x128xf32>
    tpu.vector_store %arg8[%c0_13, %c0_14], %18 {strides = array<i32>} : memref<1x128xf32, #tpu.memory_space<vmem>>, vector<1x128xf32>,
    %c0_15 = arith.constant 0 : index
    %20 = arith.index_cast %5 : i32 to index
    %c0_16 = arith.constant 0 : index
    %21 = vector.load %arg6[%c0_15, %20, %c0_16] : memref<1x8x128xf32, #tpu.memory_space<vmem>>, vector<1x8x128xf32>
    %22 = vector.shape_cast %21 : vector<1x8x128xf32> to vector<8x128xf32>
    %23 = vector.shape_cast %3 : vector<8x128xf32> to vector<1x8x128xf32>
    tpu.vector_store %arg6[%c0_15, %20, %c0_16], %23 {strides = array<i32>} : memref<1x8x128xf32, #tpu.memory_space<vmem>>, vector<1x8x128xf32>,
    %c0_i32_17 = arith.constant 0 : i32
    %24 = arith.cmpi eq, %arg1, %c0_i32_17 : i32
    %25 = arith.extui %24 : i1 to i32
    %c0_i32_18 = arith.constant 0 : i32
    %26 = arith.cmpi ne, %25, %c0_i32_18 : i32
    scf.if %26 {
      %c0_19 = arith.constant 0 : index
      %c0_20 = arith.constant 0 : index
      %27 = vector.load %arg7[%c0_19, %c0_20] : memref<1x128xf32, #tpu.memory_space<vmem>>, vector<1x128xf32>
      %cst_21 = arith.constant 0.142857149 : f32
      %28 = vector.broadcast %cst_21 : f32 to vector<1x128xf32>
      %29 = arith.mulf %27, %28 : vector<1x128xf32>
      %c0_22 = arith.constant 0 : index
      %c0_23 = arith.constant 0 : index
      %30 = vector.load %arg8[%c0_22, %c0_23] : memref<1x128xf32, #tpu.memory_space<vmem>>, vector<1x128xf32>
      %cst_24 = arith.constant 0.142857149 : f32
      %31 = vector.broadcast %cst_24 : f32 to vector<1x128xf32>
      %32 = arith.mulf %30, %31 : vector<1x128xf32>
      %33 = arith.mulf %29, %29 : vector<1x128xf32>
      %34 = arith.subf %32, %33 : vector<1x128xf32>
      %c0_25 = arith.constant 0 : index
      %c0_26 = arith.constant 0 : index
      %35 = vector.load %arg4[%c0_25, %c0_26] : memref<1x128xf32, #tpu.memory_space<vmem>>, vector<1x128xf32>
      %cst_27 = arith.constant 9.99999974E-6 : f32
      %36 = vector.broadcast %cst_27 : f32 to vector<1x128xf32>
      %37 = arith.addf %34, %36 : vector<1x128xf32>
      %38 = math.rsqrt %37 : vector<1x128xf32>
      %39 = arith.mulf %35, %38 : vector<1x128xf32>
      %c0_28 = arith.constant 0 : index
      %c0_29 = arith.constant 0 : index
      %40 = vector.load %arg5[%c0_28, %c0_29] : memref<1x128xf32, #tpu.memory_space<vmem>>, vector<1x128xf32>
      %41 = arith.mulf %29, %39 : vector<1x128xf32>
      %42 = arith.subf %40, %41 : vector<1x128xf32>
      %c0_30 = arith.constant 0 : index
      %c0_31 = arith.constant 0 : index
      %c0_32 = arith.constant 0 : index
      %43 = vector.load %arg6[%c0_30, %c0_31, %c0_32] : memref<1x8x128xf32, #tpu.memory_space<vmem>>, vector<1x8x128xf32>
      %44 = vector.shape_cast %43 : vector<1x8x128xf32> to vector<8x128xf32>
      %45 = vector.broadcast %39 : vector<1x128xf32> to vector<8x128xf32>
      %46 = arith.mulf %44, %45 : vector<8x128xf32>
      %47 = vector.broadcast %42 : vector<1x128xf32> to vector<8x128xf32>
      %48 = arith.addf %46, %47 : vector<8x128xf32>
      %cst_33 = arith.constant 5.000000e-01 : f32
      %49 = vector.broadcast %cst_33 : f32 to vector<8x128xf32>
      %50 = arith.mulf %49, %48 : vector<8x128xf32>
      %cst_34 = arith.constant 0.707106769 : f32
      %51 = vector.broadcast %cst_34 : f32 to vector<8x128xf32>
      %52 = arith.mulf %48, %51 : vector<8x128xf32>
      %53 = math.erf %52 : vector<8x128xf32>
      %cst_35 = arith.constant 1.000000e+00 : f32
      %54 = vector.broadcast %cst_35 : f32 to vector<8x128xf32>
      %55 = arith.addf %54, %53 : vector<8x128xf32>
      %56 = arith.mulf %50, %55 : vector<8x128xf32>
      %c0_36 = arith.constant 0 : index
      %c0_37 = arith.constant 0 : index
      %c0_38 = arith.constant 0 : index
      %57 = vector.load %arg6[%c0_36, %c0_37, %c0_38] : memref<1x8x128xf32, #tpu.memory_space<vmem>>, vector<1x8x128xf32>
      %58 = vector.shape_cast %57 : vector<1x8x128xf32> to vector<8x128xf32>
      %59 = vector.shape_cast %56 : vector<8x128xf32> to vector<1x8x128xf32>
      tpu.vector_store %arg6[%c0_36, %c0_37, %c0_38], %59 {strides = array<i32>} : memref<1x8x128xf32, #tpu.memory_space<vmem>>, vector<1x8x128xf32>,
    } else {
    }
    return
  }
  func.func @transform_0(%arg0: i32, %arg1: i32) -> (i32, i32, i32) {
    %c0_i32 = arith.constant 0 : i32
    %c0_i32_0 = arith.constant 0 : i32
    return %arg0, %arg1, %c0_i32 : i32, i32, i32
  }
  func.func @transform_1(%arg0: i32, %arg1: i32) -> (i32, i32) {
    %c0_i32 = arith.constant 0 : i32
    %c0_i32_0 = arith.constant 0 : i32
    %c0_i32_1 = arith.constant 0 : i32
    return %c0_i32, %c0_i32_0 : i32, i32
  }
  func.func @transform_2(%arg0: i32, %arg1: i32) -> (i32, i32) {
    %c0_i32 = arith.constant 0 : i32
    %c0_i32_0 = arith.constant 0 : i32
    %c0_i32_1 = arith.constant 0 : i32
    return %c0_i32, %c0_i32_0 : i32, i32
  }
  func.func @transform_3(%arg0: i32, %arg1: i32) -> (i32, i32) {
    %c0_i32 = arith.constant 0 : i32
    %c0_i32_0 = arith.constant 0 : i32
    %c0_i32_1 = arith.constant 0 : i32
    return %c0_i32, %c0_i32_0 : i32, i32
  }
  func.func @transform_4(%arg0: i32, %arg1: i32) -> (i32, i32, i32) {
    %c0_i32 = arith.constant 0 : i32
    %c0_i32_0 = arith.constant 0 : i32
    %c0_i32_1 = arith.constant 0 : i32
    return %arg0, %c0_i32, %c0_i32_0 : i32, i32, i32
  }
}

</mosaic_0001>

<bundles_post_ra>
// kernel: tpu_custom_call.1
= control target key start
LH: loop header
LB: loop body
LE: loop exit
PB: predicated region body
PF: predicated region fallthrough
CT: control target
= control target key end

     0   :  { %9 = vsyncpa [#allocation5], 0  ;;  %s1079_s0 = inlined_call_operand.hbm [shape: f32[2,8,128], index: 0, kind: input, shape index: {}]   ;;  %s1080_s1 = inlined_call_operand.hbm [shape: f32[128,128], index: 1, kind: input, shape index: {}]   ;;  %s1081_s2 = inlined_call_operand.vmem [shape: f32[1,128], index: 2, kind: input, shape index: {}]   ;;  %s1082_s3 = inlined_call_operand.vmem [shape: f32[1,128], index: 3, kind: input, shape index: {}]   ;;  %s1083_s4 = inlined_call_operand.hbm [shape: f32[2,8,128], index: 4, kind: output, shape index: {}]  }
   0x1   :  { %11 = vsyncpa [#allocation5 + $0x1], 0 }
   0x2   :  { %12 = vsyncpa [#allocation8], 0 }
   0x3   :  { %13 = vsyncpa [#allocation6], 0 }
   0x4   :  { %15 = vsyncpa [#allocation6 + $0x1], 0  ;;  %s852_s15 = smov 0   ;;  %s854_s16 = smov 0  }
   0x5   :  { %s856_s17 = smov 0   ;;  %s858_s18 = smov 0  }
   0x6   :  { %s860_s19 = smov 0   ;;  %s862_s20 = smov 0  }
   0x7 LB: > { %s500_s21 = sadd.s32 4294967295, %s817_s20   ;;  %s501_s22 = sadd.s32 4294967294, %s817_s20   ;;  %s817_s20 = sphi %s862_s20, %s21_s20   ;;  %s813_s19 = sphi %s860_s19, %s1107_s19   ;;  %s809_s18 = sphi %s858_s18, %s1106_s18   ;;  %s805_s17 = sphi %s856_s17, %s1105_s17   ;;  %s801_s16 = sphi %s854_s16, %s1104_s16   ;;  %s797_s15 = sphi %s852_s15, %s1103_s15  }
   0x8   : > { %p55_p0 = scmp.ne.s32.totalorder %s801_s16, %s797_s15  ;;  %p886_p1 = scmp.eq.s32.totalorder %s500_s21, 0 }
   0x9   : > { %p890_p2 = scmp.eq.s32.totalorder %s500_s21, 1  ;;  %p148_p3 = scmp.eq.s32.totalorder %s501_s22, 1 }
   0xa   : > { %s1088_s23 = scalar_select %p886_p1, 1, 0 }
   0xb   : > { %s1089_s24 = scalar_select %p890_p2, 1, 0 }
   0xc   : > { %p896_p4 = por %p886_p1, %p55_p0  ;;  %p502_p5 = scmp.ge.s32.totalorder %s817_s20, 1 }
   0xd   : > { %p901_p6 = por %p148_p3, %p55_p0  ;;  %p155_p7 = scmp.lt.s32.totalorder %s817_s20, 3 }
   0xe   : > { %s1090_s25 = scalar_select %p896_p4, 1, 0 }
   0xf   : > { %s1091_s26 = scalar_select %p901_p6, 1, 0 }
  0x10   : > { %p906_p8 = pnand %p502_p5, %p155_p7  ;;  %s819_s28 = smov [#allocation7]  }
  0x11   : > { %s167_s29 = sshll.u32 %s819_s28, 4  ;;  %s33_s5 = sadd.s32 1, %s813_s19  ;;  %s168_s29 = int_to_ptr.vmem [resolvable:$true] %s167_s29 }
  0x12   : > { %s1092_s27 = scalar_select %p906_p8, 1, 0 }
  0x13   : > { %p599_p9 = pneg %p906_p8  ;;  %s673_s8 = scalar_lea.hbm %s1080_s1, 2048 }
  0x14   : > { %p674_p12 = scmp.ne.s32.totalorder %s1080_s1, %s673_s8  ;;  %p680_p5 = scmp.lt.u32.totalorder %s673_s8, %s1080_s1 }
  0x15   : > { %p915_p11 = pnand %p599_p9, %p886_p1 }
  0x17   : > { %p675_p13 = pneg %p915_p11 }
  0x19   : > { %p676_p0 = pnand %p675_p13, %p674_p12 }
  0x1b   : > { %p677_p3 = pneg %p676_p0 }
  0x1d   : > { %p682_p7 = pnand %p680_p5, %p677_p3 }
  0x1f   : > { %685 = shalt.err (!%p682_p7)
}
  0x20   : > { %s686_s13 = scalar_lea.vmem %s168_s29, 2048  ;;  %p694_p1 = scmp.lt.s32.totalorder %s168_s29, %s168_s29 }
  0x21   : > { %p687_p9 = scmp.ne.s32.totalorder %s168_s29, %s686_s13  ;;  %p695_p4 = scmp.lt.s32.totalorder %s686_s13, %s686_s13 }
  0x23   : > { %p689_p10 = pnand %p687_p9, %p675_p13  ;;  %p696_p8 = por %p695_p4, %p694_p1 }
  0x25   : > { %p690_p6 = pneg %p689_p10 }
  0x27   : > { %p697_p2 = pnand %p696_p8, %p690_p6 }
  0x29   : > { %700 = shalt.err (!%p697_p2)
}
  0x2a   : > { %s820_s14 = smov 128   ;;  %s821_s21 = smov 8  }
  0x2b   : > { %602 = dma.hbm_to_vmem [thread:$0]  (!%p915_p11), %s1080_s1, 2048, %s168_s29, [#allocation8], %s820_s14, %s820_s14, %s821_s21  }
  0x2c   : > { %p35_p1 = scmp.ge.s32.totalorder %s33_s5, 2  ;;  %s42_s6 = sadd.s32 1, %s805_s17 }
  0x2d   : > { %p49_p2 = scmp.ne.s32.totalorder %s805_s17, %s801_s16  ;;  %p50_p4 = scmp.eq.s32.totalorder %s817_s20, 0 }
  0x2e   : > { %s1109_s5 = smov (%p35_p1, %s33_s5), 0  ;;  %p1095_p8 = scmp.ne.s32.totalorder %s1089_s24, 0 }
  0x2f   : > { %p942_p6 = por %p50_p4, %p49_p2  ;;  %s37_s30 = ssub.s32 %s813_s19, %s1109_s5 }
  0x30   : > { %p948_p10 = por %p1095_p8, %p49_p2  ;;  %p612_p12 = scmp.lt.s32.totalorder %s817_s20, 2 }
  0x31   : > { %p40_p11 = scmp.eq.s32.totalorder %s37_s30, 0  ;;  %s187_s29 = sand.u32 1, %s805_s17  }
  0x32   : > { %s505_s9 = sshll.u32 %s187_s29, 3  ;;  %s506_s11 = sshll.u32 %s813_s19, 7 }
  0x33   : > { %s957_s10 = scalar_select %p40_p11, %s805_s17, %s42_s6  }
  0x34   : > { %s963_s14 = scalar_lea.hbm %s1079_s0, %s506_s11  ;;  %s191_s24 = scalar_lea.vmem [#allocation4], %s505_s9 }
  0x35   : > { %s199_s21 = sshll.u32 %s191_s24, 4  ;;  %p969_p13 = pnand %p612_p12, %p942_p6  ;;  %s965_s21 = int_to_ptr.vmem [resolvable:$true] %s199_s21 }
  0x36   : > { %s188_s28 = scalar_lea.sflag [#allocation5], %s187_s29  ;;  %s701_s6 = scalar_lea.hbm %s963_s14, 128 }
  0x37   : > { %p702_p0 = scmp.ne.s32.totalorder %s963_s14, %s701_s6  ;;  %p703_p3 = pneg %p969_p13 }
  0x38   : > { %s706_s11 = scalar_lea.hbm %s1079_s0, 256  ;;  %p707_p9 = scmp.lt.u32.totalorder %s963_s14, %s1079_s0 }
  0x39   : > { %p704_p5 = pnand %p703_p3, %p702_p0  ;;  %p708_p1 = scmp.lt.u32.totalorder %s706_s11, %s701_s6 }
  0x3a   : > { %p710_p4 = scmp.lt.u32.totalorder %s701_s6, %s963_s14 }
  0x3b   : > { %p705_p7 = pneg %p704_p5  ;;  %p709_p2 = por %p708_p1, %p707_p9 }
  0x3d   : > { %p711_p6 = por %p710_p4, %p709_p2 }
  0x3f   : > { %p712_p8 = pnand %p711_p6, %p705_p7 }
  0x41   : > { %715 = shalt.err (!%p712_p8)
}
  0x42   : > { %s716_s29 = scalar_lea.vmem %s965_s21, 128  ;;  %s822_s13 = smov [#allocation4]  }
  0x43   : > { %p717_p12 = scmp.ne.s32.totalorder %s965_s21, %s716_s29  ;;  %s721_s24 = sshll.u32 %s822_s13, 4  ;;  %s722_s24 = int_to_ptr.vmem [resolvable:$false] %s721_s24 }
  0x44   : > { %s723_s30 = scalar_lea.vmem %s722_s24, 256  ;;  %p724_p5 = scmp.lt.s32.totalorder %s965_s21, %s722_s24 }
  0x45   : > { %p719_p11 = pnand %p717_p12, %p703_p3  ;;  %p725_p9 = scmp.lt.s32.totalorder %s723_s30, %s716_s29 }
  0x47   : > { %p720_p0 = pneg %p719_p11  ;;  %p726_p1 = por %p725_p9, %p724_p5 }
  0x49   : > { %p727_p2 = pnand %p726_p1, %p720_p0 }
  0x4b   : > { %730 = shalt.err (!%p727_p2)
}
  0x4c   : > { %606 = dma.hbm_to_vmem [thread:$0]  (!%p969_p13), %s963_s14, 128, %s965_s21, %s188_s28  }
  0x4d   : > { %p1098_p7 = scmp.ne.s32.totalorder %s1092_s27, 0 }
  0x4e   : > { %s1001_s6 = sand.u32 (!%p1098_p7), 1, %s801_s16   ;;  %p1099_p3 = scmp.ne.s32.totalorder (!%p1098_p7), %s1090_s25, 0 }
  0x4f   : > { %208 = sbr.rel (%p1098_p7) target bundleno = 419 (0x1a3), region = 36  ;;  %s508_s9 = sshll.u32 (!%p1098_p7), %s1001_s6, 3 }
  0x50   : > { %s211_s11 = scalar_lea.sflag (!%p1098_p7), [#allocation5], %s1001_s6  ;;  %s1007_s7 = scalar_lea.vmem (!%p1098_p7), [#allocation4], %s508_s9 }
  0x56   : > { %784 = dma.done.wait (%p1099_p3), %s211_s11, 128  }
  0x57   : > { %786 = vsyncadd (%p1099_p3), %s211_s11, 4294967168  ;;  %p1100_p13 = scmp.ne.s32.totalorder %s1088_s23, 0 }
  0x59   : > { %788 = dma.done.wait (%p1100_p13), [#allocation8], 2048  }
  0x5a   : > { %790 = vsyncadd (%p1100_p13), [#allocation8], 4294965248  ;;  %v823_v0 = vmov 0.0|0.0   ;;  %vm824_vm0 = vmmov 0   ;;  %v825_v1 = vmov 0.0   ;;  %v244_v2 = vld [vmem:[#allocation7] sm:$0xff]  ;;  %v376_v53 = vlaneseq }
  0x5b   : > { %567 = vmatprep.subr.bf16.mxu0 %v823_v0  ;;  %564 = vmatprep.mubr.msk.f32.mxu0 %vm824_vm0, %v825_v1  ;;  %335 = vst [vmem:[#allocation2] sm:$0x1] %v825_v1  ;;  %336 = vst [vmem:[#allocation3] sm:$0x1] %v825_v1  ;;  %v245_v3 = vld [vmem:[#allocation7 + $0x8] sm:$0xff]  ;;  %v246_v4 = vld [vmem:[#allocation7 + $0x10] sm:$0xff] }
  0x5c   : > { %v568_v5 = vpack.c.bf16 %v245_v3, %v244_v2  ;;  %v247_v6 = vld [vmem:[#allocation7 + $0x18] sm:$0xff]  ;;  %v248_v8 = vld [vmem:[#allocation7 + $0x20] sm:$0xff]  ;;  %v249_v9 = vld [vmem:[#allocation7 + $0x28] sm:$0xff]  ;;  %v377_v54 = vshrl.u32 %v376_v53, 7  ;;  %s512_s21 = sshll.u32 %s809_s18, 7  ;;  %s242_s22 = scalar_lea.vmem [#allocation9], %s508_s9 }
  0x5d   : > { %v571_v7 = vpack.c.bf16 %v247_v6, %v246_v4  ;;  %v574_v10 = vpack.c.bf16 %v249_v9, %v248_v8  ;;  %v250_v11 = vld [vmem:[#allocation7 + $0x30] sm:$0xff]  ;;  %v251_v12 = vld [vmem:[#allocation7 + $0x38] sm:$0xff]  ;;  %v252_v14 = vld [vmem:[#allocation7 + $0x40] sm:$0xff]  ;;  %s409_s28 = sshll.u32 %s242_s22, 4  ;;  %s1030_s13 = scalar_lea.hbm %s1083_s4, %s512_s21  ;;  %s1032_s28 = int_to_ptr.vmem [resolvable:$true] %s409_s28 }
  0x5e   : > { %569 = vmatpush3.bf16.msra.mxu0 %v568_v5  ;;  %v577_v13 = vpack.c.bf16 %v251_v12, %v250_v11  ;;  %v253_v15 = vld [vmem:[#allocation7 + $0x48] sm:$0xff]  ;;  %v254_v17 = vld [vmem:[#allocation7 + $0x50] sm:$0xff]  ;;  %v255_v18 = vld [vmem:[#allocation7 + $0x58] sm:$0xff]  ;;  %v378_v56 = vsub.s32 0, %v377_v54  ;;  %s396_s24 = scalar_lea.sflag [#allocation6], %s1001_s6  ;;  %s731_s30 = scalar_lea.vmem %s1032_s28, 128 }
  0x5f   : > { %570 = vmatprep.subr.bf16.mxu0 %v823_v0  ;;  %v580_v16 = vpack.c.bf16 %v253_v15, %v252_v14  ;;  %v583_v19 = vpack.c.bf16 %v255_v18, %v254_v17  ;;  %v256_v20 = vld [vmem:[#allocation7 + $0x60] sm:$0xff]  ;;  %v257_v21 = vld [vmem:[#allocation7 + $0x68] sm:$0xff]  ;;  %v258_v23 = vld [vmem:[#allocation7 + $0x70] sm:$0xff]  ;;  %p732_p4 = scmp.ne.s32.totalorder %s1032_s28, %s731_s30  ;;  %s826_s18 = smov [#allocation9]  }
  0x60   : > { %v586_v22 = vpack.c.bf16 %v257_v21, %v256_v20  ;;  %v259_v24 = vld [vmem:[#allocation7 + $0x78] sm:$0xff]  ;;  %v367_v55 = vld [vmem:[%s1081_s2] sm:$0x1]  ;;  %s735_s9 = sshll.u32 %s826_s18, 4  ;;  %s736_s9 = int_to_ptr.vmem [resolvable:$false] %s735_s9 }
  0x61   : > { %v589_v25 = vpack.c.bf16 %v259_v24, %v258_v23  ;;  %v243_v26 = vld [vmem:[%s1007_s7] sm:$0xff]  ;;  %v371_v59 = vld [vmem:[%s1082_s3] sm:$0x1]  ;;  %p733_p6 = pnand %p732_p4, %p948_p10  ;;  %s737_s11 = scalar_lea.vmem %s736_s9, 256 }
  0x62   : > { %572 = vmatpush3.bf16.msra.mxu0 %v571_v7  ;;  %v337_v39 = vld [vmem:[#allocation2] sm:$0x1]  ;;  %v346_v42 = vld [vmem:[#allocation3] sm:$0x1]  ;;  %p738_p12 = scmp.lt.s32.totalorder %s1032_s28, %s736_s9  ;;  %p739_p11 = scmp.lt.s32.totalorder %s737_s11, %s731_s30 }
  0x63   : > { %573 = vmatprep.subr.bf16.mxu0 %v823_v0  ;;  %p734_p8 = pneg %p733_p6 }
  0x64   : > { %p740_p0 = por %p739_p11, %p738_p12 }
  0x66   : > { %575 = vmatpush3.bf16.msra.mxu0 %v574_v10  ;;  %p741_p5 = pnand %p740_p0, %p734_p8 }
  0x67   : > { %576 = vmatprep.subr.bf16.mxu0 %v823_v0 }
  0x6a   : > { %578 = vmatpush3.bf16.msra.mxu0 %v577_v13 }
  0x6b   : > { %579 = vmatprep.subr.bf16.mxu0 %v823_v0 }
  0x6e   : > { %581 = vmatpush3.bf16.msra.mxu0 %v580_v16 }
  0x6f   : > { %582 = vmatprep.subr.bf16.mxu0 %v823_v0 }
  0x72   : > { %584 = vmatpush3.bf16.msra.mxu0 %v583_v19 }
  0x73   : > { %585 = vmatprep.subr.bf16.mxu0 %v823_v0 }
  0x76   : > { %587 = vmatpush3.bf16.msra.mxu0 %v586_v22 }
  0x77   : > { %588 = vmatprep.subr.bf16.mxu0 %v823_v0 }
  0x7a   : > { %590 = vmatpush3.bf16.msra.mxu0 %v589_v25 }
  0x7d   : > { %565 = vmatmul.mubr.f32.vlgmr.msra.gmra.mrb[0].mxu0 %v243_v26 }
 0x150   : > { %v326_v27 = vpop.f32.mrb[0].mxu0 }
 0x151   : > { %v338_v28 = vrot.slane %v326_v27, 4  ;;  %v347_v29 = vmul.f32 %v326_v27, %v326_v27  ;;  %v566_v30 = vpop.f32.mrb[1].mxu0 }
 0x153   : > { %v339_v31 = vadd.f32 %v338_v28, %v326_v27  ;;  %v348_v32 = vrot.slane %v347_v29, 4 }
 0x155   : > { %v340_v33 = vrot.slane %v339_v31, 2  ;;  %v349_v34 = vadd.f32 %v348_v32, %v347_v29 }
 0x157   : > { %v341_v35 = vadd.f32 %v340_v33, %v339_v31  ;;  %v350_v36 = vrot.slane %v349_v34, 2 }
 0x159   : > { %v342_v37 = vrot.slane %v341_v35, 1  ;;  %v351_v38 = vadd.f32 %v350_v36, %v349_v34 }
 0x15b   : > { %v343_v40 = vadd.f32 %v342_v37, %v341_v35  ;;  %v352_v41 = vrot.slane %v351_v38, 1 }
 0x15d   : > { %v344_v43 = vadd.f32 %v343_v40, %v337_v39  ;;  %v353_v44 = vadd.f32 %v352_v41, %v351_v38 }
 0x15f   : > { %345 = vst [vmem:[#allocation2] sm:$0x1] %v344_v43  ;;  %v354_v45 = vadd.f32 %v353_v44, %v346_v42 }
 0x161   : > { %355 = vst [vmem:[#allocation3] sm:$0x1] %v354_v45 }
 0x166   : > { %v361_v46 = vld [vmem:[#allocation2] sm:$0x1] }
 0x167   : > { %v362_v47 = vmul.f32 0.14285715, %v361_v46 }
 0x168   : > { %v363_v48 = vld [vmem:[#allocation3] sm:$0x1] }
 0x169   : > { %v364_v49 = vmul.f32 0.14285715, %v363_v48  ;;  %v365_v50 = vmul.f32 %v362_v47, %v362_v47 }
 0x16b   : > { %v366_v51 = vsub.f32 %v364_v49, %v365_v50 }
 0x16d   : > { %v368_v52 = vadd.f32 1e-05, %v366_v51 }
 0x16f   : > { %669 = vrsqrt.f32 %v368_v52 }
 0x179   : > { %v670_v57 = vpop.eup %669 }
 0x17a   : > { %v370_v58 = vmul.f32 %v670_v57, %v367_v55 }
 0x17c   : > { %v372_v60 = vmul.f32 %v370_v58, %v362_v47  ;;  %v379_v61 = vrot.slane %v370_v58, %v378_v56 }
 0x17e   : > { %v373_v62 = vsub.f32 %v371_v59, %v372_v60  ;;  %v381_v63 = vmul.f32 %v379_v61, %v326_v27 }
 0x180   : > { %v386_v0 = vrot.slane %v373_v62, %v378_v56 }
 0x182   : > { %v388_v1 = vadd.f32 %v386_v0, %v381_v63 }
 0x184   : > { %v390_v2 = vmul.f32 0.70710677, %v388_v1  ;;  %v389_v4 = vmul.f32 0.5, %v388_v1 }
 0x186   : > { %671 = verf.f32 %v390_v2 }
 0x190   : > { %v672_v3 = vpop.eup %671 }
 0x191   : > { %v392_v5 = vadd.f32 1.0, %v672_v3 }
 0x193   : > { %v393_v6 = vmul.f32 %v392_v5, %v389_v4 }
 0x195   : > { %394 = vst [vmem:[%s242_s22] sm:$0xff] %v393_v6 }
 0x196   : > { %744 = shalt.err (!%p741_p5)
}
 0x197   : > { %s745_s6 = scalar_lea.hbm %s1030_s13, 128  ;;  %s749_s25 = scalar_lea.hbm %s1083_s4, 256 }
 0x198   : > { %p746_p9 = scmp.ne.s32.totalorder %s1030_s13, %s745_s6  ;;  %p750_p7 = scmp.lt.u32.totalorder %s1030_s13, %s1083_s4 }
 0x199   : > { %p751_p3 = scmp.lt.u32.totalorder %s749_s25, %s745_s6  ;;  %p753_p4 = scmp.lt.u32.totalorder %s745_s6, %s1030_s13 }
 0x19a   : > { %p747_p1 = pnand %p746_p9, %p948_p10 }
 0x19b   : > { %p752_p13 = por %p751_p3, %p750_p7 }
 0x19c   : > { %p748_p2 = pneg %p747_p1 }
 0x19d   : > { %p754_p6 = por %p753_p4, %p752_p13 }
 0x19f   : > { %p755_p8 = pnand %p754_p6, %p748_p2 }
 0x1a1   : > { %758 = shalt.err (!%p755_p8)
}
 0x1a2   : > { %597 = dma.vmem_to_hbm [thread:$0]  (%p948_p10), %s1032_s28, 128, %s1030_s13, %s396_s24  }
 0x1a3 PF: > { %s421_s21 = sand.u32 1, %s797_s15   ;;  %p1101_p12 = scmp.ne.s32.totalorder %s1091_s26, 0 }
 0x1a4   : > { %p1102_p11 = scmp.ge.s32.totalorder %s817_s20, 2  ;;  %s422_s22 = scalar_lea.sflag [#allocation6], %s421_s21 }
 0x1a6   : > { %p608_p0 = pnand %p1102_p11, %p1101_p12 }
 0x1a8   : > { %792 = dma.done.wait (!%p608_p0), %s422_s22, 128  }
 0x1a9   : > { %794 = vsyncadd (!%p608_p0), %s422_s22, 4294967168  ;;  %s21_s20 = sadd.s32 1, %s817_s20   ;;  %s1103_s15 = smov %s801_s16 }
 0x1aa   : > { %p18_p5 = scmp.ge.s32.totalorder %s21_s20, 4   ;;  %s1104_s16 = smov %s805_s17 }
 0x1ab   : > { %s1105_s17 = smov %s957_s10  ;;  %s1106_s18 = smov %s813_s19 }
 0x1ac   : > { %s1107_s19 = smov %s1109_s5  ;;  %20 = sbr.rel (!%p18_p5) target bundleno = 7 (0x7), region = 94 }
 0x1b3   :  { %427 = vsyncpa [#allocation5], 1 }
 0x1b4   :  { %429 = vsyncpa [#allocation5 + $0x1], 1 }
 0x1b5   :  { %430 = vsyncpa [#allocation8], 1 }
 0x1b6   :  { %431 = vsyncpa [#allocation6], 1 }
 0x1b7   :  { %433 = vsyncpa [#allocation6 + $0x1], 1 }

</bundles_post_ra>
